<compile_context>
chip_gen: v6e
topology: v6e:2x2x1
jax: 0.10.0
libtpu: 0.0.40
codegen_flags: <defaults>
</compile_context>

<pallas_src>
import jax
import jax.numpy as jnp
from jax.experimental import pallas as pl
from jax.experimental.pallas import tpu as pltpu


# --------------------------------------------------------------------------- kernel
def _ce_partial_kernel(y_hat_ref, y_ref, out_ref, acc_ref):
    """Accumulates per-split [sum(CE), count(valid)] into SMEM; writes once at end."""
    i = pl.program_id(1)
    n_i = pl.num_programs(1)

    @pl.when(i == 0)
    def _init():
        acc_ref[0] = jnp.float32(0.0)
        acc_ref[1] = jnp.float32(0.0)

    logits = y_hat_ref[...].astype(jnp.float32)          # (TB, C)
    labels = y_ref[...]                                  # (TB, 1) int32
    tb, c = logits.shape

    # ignore_index (-100), batch-tail padding and phantom-tile rows are all < 0.
    valid = labels >= 0

    m = jnp.max(logits, axis=-1, keepdims=True)                       # (TB, 1)
    sumexp = jnp.sum(jnp.exp(logits - m), axis=-1, keepdims=True)     # (TB, 1)
    col = jax.lax.broadcasted_iota(jnp.int32, (tb, c), 1)
    picked = jnp.sum(jnp.where(col == labels, logits, 0.0),
                     axis=-1, keepdims=True)                          # raw picked logit
    per_sample = jnp.where(valid, m + jnp.log(sumexp) - picked, 0.0)

    acc_ref[0] += jnp.sum(per_sample)
    acc_ref[1] += jnp.sum(valid.astype(jnp.float32))

    @pl.when(i == n_i - 1)
    def _write():
        lane = jax.lax.broadcasted_iota(jnp.int32, out_ref.shape, 1)  # (1, 128)
        out_ref[...] = jnp.where(lane == 0, acc_ref[0],
                                 jnp.where(lane == 1, acc_ref[1], 0.0))


# ------------------------------------------------------------------------ sizing
def _vmem_capacity_bytes():
    try:
        info = pltpu.get_tpu_info()
        for name in ("vmem_capacity_bytes", "vmem_size_bytes", "vmem_bytes"):
            cap = getattr(info, name, None)
            if cap:
                return int(cap)
    except Exception:
        pass
    return 64 << 20        # conservative fallback = v7x per-TensorCore VMEM


def _default_num_splits():
    # Only v7x (among the target generations) has 2 TensorCores per chip that can
    # shard a "parallel" grid axis; on single-TC v5e/v6e a split just adds overhead.
    try:
        kind = jax.devices()[0].device_kind.lower()
    except Exception:
        return 1
    return 2 if "7" in kind else 1


def _pick_tile_rows(batch, n_classes, itemsize, vmem_cap):
    """Largest batch tile that fits the VMEM budget (inputs + f32 temporaries)."""
    gran = 16 if itemsize == 2 else 8                    # bf16 sublane packing
    cp = max(128, ((n_classes + 127) // 128) * 128)      # lane-padded width in VMEM
    per_row = (2 * cp * itemsize                         # double-buffered logit tile
               + 2 * 128 * 4                             # double-buffered (TB,1) labels
               + 5 * cp * 4)                             # f32 temporaries in the body
    budget = int(vmem_cap * 0.40)
    tb = max(gran, (budget // per_row // gran) * gran)
    tb = min(tb, 8192)
    b_up = ((batch + gran - 1) // gran) * gran
    return min(tb, b_up)


# ------------------------------------------------------------------------ wrapper
def pcbm_loss(y_hat, y, weight, bias, *, lam, alpha, reduction="sum",
              max_rows_per_tile=None, num_splits=None):
    """Pallas implementation of PCBMLoss.forward for a Linear classifier (W, b)."""
    # TODO(synk): only Linear classifiers (weight, bias) are supported here; an
    # arbitrary classifier.parameters() list would just extend the elastic-net stack.
    assert 0.0 <= alpha <= 1.0, alpha
    assert reduction in ("sum", "mean")
    n_classes, n_concepts = weight.shape
    batch, c = y_hat.shape
    assert c == n_classes
    en_const = float(lam) / (n_classes * n_concepts)

    itemsize = jnp.dtype(y_hat.dtype).itemsize
    vmem_cap = _vmem_capacity_bytes()
    tb = _pick_tile_rows(batch, n_classes, itemsize, vmem_cap)
    if max_rows_per_tile is not None:
        gran = 16 if itemsize == 2 else 8
        tb = max(gran, min(tb, (int(max_rows_per_tile) // gran) * gran))

    tiles_total = -(-batch // tb)                        # cdiv
    ns = _default_num_splits() if num_splits is None else int(num_splits)
    ns = max(1, min(ns, tiles_total))
    tps = -(-tiles_total // ns)                          # tiles per split
    b_pad = ns * tps * tb
    last_block = tiles_total - 1

    # Labels: tiny int32 column, padded with ignore_index so batch-tail and phantom
    # tiles contribute nothing (the unpadded logits read may overhang; it is masked).
    y_col = jnp.asarray(y).astype(jnp.int32).reshape(batch, 1)
    y_col = jnp.pad(y_col, ((0, b_pad - batch), (0, 0)), constant_values=-100)

    # VMEM limit: ~96 MiB on 128-MiB parts (v5e/v6e), ~48 MiB on v7x (64 MiB/TC).
    vmem_limit = max(32 << 20, min(int(vmem_cap * 0.75), vmem_cap - (8 << 20)))

    out = pl.pallas_call(
        _ce_partial_kernel,
        out_shape=jax.ShapeDtypeStruct((ns, 128), jnp.float32),
        grid_spec=pltpu.PrefetchScalarGridSpec(
            num_scalar_prefetch=0,
            grid=(ns, tps),
            in_specs=[
                # Logits: stream the true (unpadded) array.  Clamp the block index so
                # no DMA starts fully out of bounds; phantom tiles re-read the last
                # real block and are neutralized by their padded -100 labels.
                pl.BlockSpec((tb, n_classes),
                             lambda p, i: (jnp.minimum(p * tps + i, last_block), 0)),
                pl.BlockSpec((tb, 1), lambda p, i: (p * tps + i, 0)),
            ],
            out_specs=pl.BlockSpec((1, 128), lambda p, i: (p, 0)),
            scratch_shapes=[pltpu.SMEM((2,), jnp.float32)],
        ),
        compiler_params=pltpu.CompilerParams(
            dimension_semantics=("parallel", "arbitrary"),
            vmem_limit_bytes=int(vmem_limit),
        ),
    )(y_hat, y_col)

    ce_sum = jnp.sum(out[:, 0])
    valid_cnt = jnp.sum(out[:, 1])
    # NOTE: like PyTorch, reduction='mean' with every label ignored gives 0/0 -> NaN.
    base = ce_sum if reduction == "sum" else ce_sum / valid_cnt

    # Elastic net over the classifier parameters: a tiny reduction kept OUT of the
    # streamed pipeline (per perf review); XLA overlaps it with the kernel.
    def _elastic_net(p):
        p = p.astype(jnp.float32)
        return alpha * jnp.sum(jnp.abs(p)) + (1.0 - alpha) * jnp.sum(p * p)

    en_terms = jnp.stack([_elastic_net(weight), _elastic_net(bias)])
    en = jnp.sum(en_terms) if reduction == "sum" else jnp.mean(en_terms)
    return base + en_const * en


# ---------------------------------------------------------------------- reference
def _pcbm_loss_ref(y_hat, y, weight, bias, *, lam, alpha, reduction="sum"):
    """Pure-JAX reference mirroring the PyTorch module (incl. ignore_index=-100)."""
    n_classes, n_concepts = weight.shape
    en_const = lam / (n_classes * n_concepts)
    logits = y_hat.astype(jnp.float32)
    y = y.astype(jnp.int32)
    valid = y >= 0
    safe_y = jnp.where(valid, y, 0)
    lse = jax.scipy.special.logsumexp(logits, axis=-1)
    picked = jnp.take_along_axis(logits, safe_y[:, None], axis=-1)[:, 0]
    per_sample = jnp.where(valid, lse - picked, 0.0)
    if reduction == "sum":
        base = jnp.sum(per_sample)
    else:
        base = jnp.sum(per_sample) / jnp.sum(valid.astype(jnp.float32))
    w32, b32 = weight.astype(jnp.float32), bias.astype(jnp.float32)
    per_param = jnp.stack([
        alpha * jnp.sum(jnp.abs(w32)) + (1 - alpha) * jnp.sum(w32 ** 2),
        alpha * jnp.sum(jnp.abs(b32)) + (1 - alpha) * jnp.sum(b32 ** 2),
    ])
    reduce_fn = jnp.sum if reduction == "sum" else jnp.mean
    return base + en_const * reduce_fn(per_param)


if __name__ == "__main__":
    key = jax.random.PRNGKey(0)

    # ---- Test 1: small shapes, 'sum' reduction, single tile ----
    B, n_concepts, n_classes = 8, 32, 16
    lam, alpha = 1e-3, 0.5
    k_w, k_b, k_x, k_y, key = jax.random.split(key, 5)
    weight = jax.random.normal(k_w, (n_classes, n_concepts), jnp.float32) * 0.1
    bias = jax.random.normal(k_b, (n_classes,), jnp.float32) * 0.1
    concepts = jax.random.normal(k_x, (B, n_concepts), jnp.float32)
    y_hat = concepts @ weight.T + bias
    y = jax.random.randint(k_y, (B,), 0, n_classes, dtype=jnp.int32)

    loss = pcbm_loss(y_hat, y, weight, bias, lam=lam, alpha=alpha, reduction="sum")
    loss = jax.block_until_ready(loss)
    ref = _pcbm_loss_ref(y_hat, y, weight, bias, lam=lam, alpha=alpha, reduction="sum")
    assert jnp.allclose(loss, ref, rtol=1e-5, atol=1e-4), (loss, ref)

    # ---- Test 2: multi-tile, forced 2-way split (exercises the phantom-tile path),
    #      'mean' reduction, ignore_index(-100), batch not a multiple of the tile ----
    B2, n_concepts2, n_classes2 = 700, 20, 37
    lam2, alpha2 = 2e-3, 0.3
    k_w, k_b, k_x, k_y, key = jax.random.split(key, 5)
    weight2 = jax.random.normal(k_w, (n_classes2, n_concepts2), jnp.float32) * 0.1
    bias2 = jax.random.normal(k_b, (n_classes2,), jnp.float32) * 0.1
    concepts2 = jax.random.normal(k_x, (B2, n_concepts2), jnp.float32)
    y_hat2 = concepts2 @ weight2.T + bias2
    y2 = jax.random.randint(k_y, (B2,), 0, n_classes2, dtype=jnp.int32)
    y2 = y2.at[::50].set(-100)                            # exercise ignore_index

    loss2 = pcbm_loss(y_hat2, y2, weight2, bias2, lam=lam2, alpha=alpha2,
                      reduction="mean", max_rows_per_tile=256, num_splits=2)
    loss2 = jax.block_until_ready(loss2)
    ref2 = _pcbm_loss_ref(y_hat2, y2, weight2, bias2, lam=lam2, alpha=alpha2,
                          reduction="mean")
    assert jnp.allclose(loss2, ref2, rtol=1e-5, atol=1e-4), (loss2, ref2)

    print("KERNEL_OK")
</pallas_src>

<mosaic_0001>
module attributes {stable_mosaic.version = 11 : i64} {
  func.func @_ce_partial_kernel(%arg0: i32, %arg1: i32, %arg2: memref<8x16xf32, #tpu.memory_space<vmem>>, %arg3: memref<8x1xi32, #tpu.memory_space<vmem>>, %arg4: memref<1x128xf32, #tpu.memory_space<vmem>>, %arg5: memref<2xf32, #tpu.memory_space<smem>>) attributes {dimension_semantics = [#tpu.dimension_semantics<parallel>, #tpu.dimension_semantics<arbitrary>], iteration_bounds = array<i64: 1, 1>, scalar_prefetch = 0 : i64, scratch_operands = 1 : i64, tpu.core_type = #tpu.core_type<tc>, window_params = [{transform_indices = @transform_0, window_bounds = array<i64: 8, 16>}, {transform_indices = @transform_1, window_bounds = array<i64: 8, 1>}, {transform_indices = @transform_2, window_bounds = array<i64: 1, 128>}]} {
    %c0_i32 = arith.constant 0 : i32
    %0 = arith.cmpi eq, %arg1, %c0_i32 : i32
    %1 = arith.extui %0 : i1 to i32
    %c0_i32_0 = arith.constant 0 : i32
    %2 = arith.cmpi ne, %1, %c0_i32_0 : i32
    scf.if %2 {
      %cst_16 = arith.constant 0.000000e+00 : f32
      %c0_17 = arith.constant 0 : index
      %45 = memref.load %arg5[%c0_17] : memref<2xf32, #tpu.memory_space<smem>>
      memref.store %cst_16, %arg5[%c0_17] : memref<2xf32, #tpu.memory_space<smem>>
      %cst_18 = arith.constant 0.000000e+00 : f32
      %c1_19 = arith.constant 1 : index
      %46 = memref.load %arg5[%c1_19] : memref<2xf32, #tpu.memory_space<smem>>
      memref.store %cst_18, %arg5[%c1_19] : memref<2xf32, #tpu.memory_space<smem>>
    } else {
    }
    %c0 = arith.constant 0 : index
    %c0_1 = arith.constant 0 : index
    %3 = vector.load %arg2[%c0, %c0_1] : memref<8x16xf32, #tpu.memory_space<vmem>>, vector<8x16xf32>
    %c0_2 = arith.constant 0 : index
    %c0_3 = arith.constant 0 : index
    %4 = vector.load %arg3[%c0_2, %c0_3] : memref<8x1xi32, #tpu.memory_space<vmem>>, vector<8x1xi32>
    %c0_i32_4 = arith.constant 0 : i32
    %5 = vector.broadcast %c0_i32_4 : i32 to vector<8x1xi32>
    %6 = arith.cmpi sge, %4, %5 : vector<8x1xi32>
    %cst = arith.constant dense<0xFF800000> : vector<8xf32>
    %7 = vector.multi_reduction <maximumf>, %3, %cst [1] : vector<8x16xf32> to vector<8xf32>
    %8 = vector.shape_cast %7 : vector<8xf32> to vector<8x1xf32>
    %9 = vector.broadcast %8 : vector<8x1xf32> to vector<8x16xf32>
    %10 = arith.subf %3, %9 : vector<8x16xf32>
    %11 = math.exp %10 : vector<8x16xf32>
    %cst_5 = arith.constant dense<0.000000e+00> : vector<8xf32>
    %12 = vector.multi_reduction <add>, %11, %cst_5 [1] : vector<8x16xf32> to vector<8xf32>
    %13 = vector.shape_cast %12 : vector<8xf32> to vector<8x1xf32>
    %14 = tpu.iota {dimensions = array<i32: 1>} : vector<8x16xi32>
    %15 = vector.broadcast %4 : vector<8x1xi32> to vector<8x16xi32>
    %16 = arith.cmpi eq, %14, %15 : vector<8x16xi32>
    %cst_6 = arith.constant 0.000000e+00 : f32
    %17 = vector.broadcast %cst_6 : f32 to vector<8x16xf32>
    %18 = arith.select %16, %3, %17 : vector<8x16xi1>, vector<8x16xf32>
    %cst_7 = arith.constant dense<0.000000e+00> : vector<8xf32>
    %19 = vector.multi_reduction <add>, %18, %cst_7 [1] : vector<8x16xf32> to vector<8xf32>
    %20 = vector.shape_cast %19 : vector<8xf32> to vector<8x1xf32>
    %21 = math.log %13 : vector<8x1xf32>
    %22 = arith.addf %8, %21 : vector<8x1xf32>
    %23 = arith.subf %22, %20 : vector<8x1xf32>
    %cst_8 = arith.constant 0.000000e+00 : f32
    %24 = vector.broadcast %cst_8 : f32 to vector<8x1xf32>
    %25 = arith.select %6, %23, %24 : vector<8x1xi1>, vector<8x1xf32>
    %c0_9 = arith.constant 0 : index
    %26 = memref.load %arg5[%c0_9] : memref<2xf32, #tpu.memory_space<smem>>
    %27 = vector.shape_cast %25 : vector<8x1xf32> to vector<1x8x1xf32>
    %cst_10 = arith.constant dense<0.000000e+00> : vector<1xf32>
    %28 = vector.multi_reduction <add>, %27, %cst_10 [1, 2] : vector<1x8x1xf32> to vector<1xf32>
    %29 = vector.shape_cast %28 : vector<1xf32> to vector<1x1x1xf32>
    %30 = vector.extract %29[0, 0, 0] : f32 from vector<1x1x1xf32>
    %31 = arith.addf %26, %30 : f32
    %c0_11 = arith.constant 0 : index
    %32 = memref.load %arg5[%c0_11] : memref<2xf32, #tpu.memory_space<smem>>
    memref.store %31, %arg5[%c0_11] : memref<2xf32, #tpu.memory_space<smem>>
    %c1 = arith.constant 1 : index
    %33 = memref.load %arg5[%c1] : memref<2xf32, #tpu.memory_space<smem>>
    %34 = arith.extui %6 : vector<8x1xi1> to vector<8x1xi32>
    %35 = arith.sitofp %34 : vector<8x1xi32> to vector<8x1xf32>
    %36 = vector.shape_cast %35 : vector<8x1xf32> to vector<1x8x1xf32>
    %cst_12 = arith.constant dense<0.000000e+00> : vector<1xf32>
    %37 = vector.multi_reduction <add>, %36, %cst_12 [1, 2] : vector<1x8x1xf32> to vector<1xf32>
    %38 = vector.shape_cast %37 : vector<1xf32> to vector<1x1x1xf32>
    %39 = vector.extract %38[0, 0, 0] : f32 from vector<1x1x1xf32>
    %40 = arith.addf %33, %39 : f32
    %c1_13 = arith.constant 1 : index
    %41 = memref.load %arg5[%c1_13] : memref<2xf32, #tpu.memory_space<smem>>
    memref.store %40, %arg5[%c1_13] : memref<2xf32, #tpu.memory_space<smem>>
    %c0_i32_14 = arith.constant 0 : i32
    %42 = arith.cmpi eq, %arg1, %c0_i32_14 : i32
    %43 = arith.extui %42 : i1 to i32
    %c0_i32_15 = arith.constant 0 : i32
    %44 = arith.cmpi ne, %43, %c0_i32_15 : i32
    scf.if %44 {
      %45 = tpu.iota {dimensions = array<i32: 1>} : vector<1x128xi32>
      %c0_i32_16 = arith.constant 0 : i32
      %46 = vector.broadcast %c0_i32_16 : i32 to vector<1x128xi32>
      %47 = arith.cmpi eq, %45, %46 : vector<1x128xi32>
      %c0_17 = arith.constant 0 : index
      %48 = memref.load %arg5[%c0_17] : memref<2xf32, #tpu.memory_space<smem>>
      %c1_i32 = arith.constant 1 : i32
      %49 = vector.broadcast %c1_i32 : i32 to vector<1x128xi32>
      %50 = arith.cmpi eq, %45, %49 : vector<1x128xi32>
      %c1_18 = arith.constant 1 : index
      %51 = memref.load %arg5[%c1_18] : memref<2xf32, #tpu.memory_space<smem>>
      %cst_19 = arith.constant 0.000000e+00 : f32
      %52 = vector.broadcast %51 : f32 to vector<1x128xf32>
      %53 = vector.broadcast %cst_19 : f32 to vector<1x128xf32>
      %54 = arith.select %50, %52, %53 : vector<1x128xi1>, vector<1x128xf32>
      %55 = vector.broadcast %48 : f32 to vector<1x128xf32>
      %56 = arith.select %47, %55, %54 : vector<1x128xi1>, vector<1x128xf32>
      %c0_20 = arith.constant 0 : index
      %c0_21 = arith.constant 0 : index
      %57 = vector.load %arg4[%c0_20, %c0_21] : memref<1x128xf32, #tpu.memory_space<vmem>>, vector<1x128xf32>
      tpu.vector_store %arg4[%c0_20, %c0_21], %56 {strides = array<i32>} : memref<1x128xf32, #tpu.memory_space<vmem>>, vector<1x128xf32>,
    } else {
    }
    return
  }
  func.func @transform_0(%arg0: i32, %arg1: i32) -> (i32, i32) {
    %c1_i32 = arith.constant 1 : i32
    %0 = arith.muli %arg0, %c1_i32 : i32
    %1 = arith.addi %0, %arg1 : i32
    %c0_i32 = arith.constant 0 : i32
    %2 = arith.minsi %1, %c0_i32 : i32
    %c0_i32_0 = arith.constant 0 : i32
    %c0_i32_1 = arith.constant 0 : i32
    return %2, %c0_i32_0 : i32, i32
  }
  func.func @transform_1(%arg0: i32, %arg1: i32) -> (i32, i32) {
    %c1_i32 = arith.constant 1 : i32
    %0 = arith.muli %arg0, %c1_i32 : i32
    %1 = arith.addi %0, %arg1 : i32
    %c0_i32 = arith.constant 0 : i32
    %c0_i32_0 = arith.constant 0 : i32
    return %1, %c0_i32 : i32, i32
  }
  func.func @transform_2(%arg0: i32, %arg1: i32) -> (i32, i32) {
    %c0_i32 = arith.constant 0 : i32
    %c0_i32_0 = arith.constant 0 : i32
    return %arg0, %c0_i32 : i32, i32
  }
}

</mosaic_0001>

<bundles_post_ra>
// kernel: tpu_custom_call.1
= control target key start
LH: loop header
LB: loop body
LE: loop exit
PB: predicated region body
PF: predicated region fallthrough
CT: control target
= control target key end

     0   :  { %vm67_vm0 = vcmask 130048   ;;  %s228_s0 = inlined_call_operand.vmem [shape: f32[8,16], index: 0, kind: input, shape index: {}]   ;;  %s229_s1 = inlined_call_operand.vmem [shape: s32[8,1], index: 1, kind: input, shape index: {}]   ;;  %s230_s2 = inlined_call_operand.hbm [shape: f32[1,128], index: 2, kind: output, shape index: {}]  }
   0x1   :  { %v64_v0 = vld [vmem:[%s228_s0] sm:$0xff] }
   0x2   :  { %7 = vsyncpa [#allocation4], 0  ;;  %v68_v1 = vsel %vm67_vm0, %v64_v0, -inf  ;;  %v198_v2 = vmov 0   ;;  %v65_v3 = vld [vmem:[%s229_s1] sm:$0xff]  ;;  %v77_v7 = vlaneseq  ;;  %vm93_vm3 = vcmask 7168  }
   0x3   :  { %171 = vset.pattern.permute.xlu0 %v198_v2  ;;  %vm66_vm2 = vcmp.ge.s32.totalorder %v65_v3, 0  ;;  %v199_v21 = vmov 0.0   ;;  %s200_s1 = smov [#allocation3]  }
   0x4   :  { %69 = vmax.xlane.f32.xlu0 %v68_v1  ;;  %v78_v8 = vand.u32 127, %v77_v7  ;;  %v162_v22 = vsel %vm66_vm2, 1.0, %v199_v21  ;;  %s141_s13 = sshll.u32 %s200_s1, 4  ;;  %s142_s13 = int_to_ptr.vmem [resolvable:$true] %s141_s13 }
   0x5   :  { %v110_v24 = vsel %vm93_vm3, %v162_v22, 0.0  ;;  %s176_s15 = scalar_lea.vmem %s142_s13, 16  ;;  %s180_s16 = scalar_lea.vmem %s142_s13, 32 }
   0x6   :  { %vm128_vm4 = vcmp.eq.s32.totalorder %v78_v8, 1  ;;  %vm126_vm5 = vcmp.eq.s32.totalorder %v78_v8, 0  ;;  %p177_p0 = scmp.ne.s32.totalorder %s142_s13, %s176_s15  ;;  %p181_p1 = scmp.lt.s32.totalorder %s142_s13, %s142_s13 }
   0x7   :  { %p182_p2 = scmp.lt.s32.totalorder %s180_s16, %s176_s15 }
   0x9   :  { %p183_p3 = por %p182_p2, %p181_p1 }
   0xb   :  { %p184_p4 = pnand %p183_p3, %p177_p0 }
  0x1a   :  { %80 = vperm.xlu0 %171, %v65_v3  }
  0x8d   :  { %v70_v4 = vpop.xlane.xlu0 %69 }
  0x8e   :  { %v71_v5 = vsub.f32 %v64_v0, %v70_v4 }
  0x90   :  { %v72_v6 = vmul.f32 1.442695, %v71_v5 }
  0x92   :  { %172 = vpow2.f32 %v72_v6 }
  0x95   :  { %v81_v9 = vpop.permute.xlu0 %80 }
  0x96   :  { %vm82_vm1 = vcmp.eq.s32.totalorder %v78_v8, %v81_v9 }
  0x97   :  { %v83_v11 = vsel %vm82_vm1, %v64_v0, 0.0 }
  0x98   :  { %v84_v13 = vsel %vm67_vm0, %v83_v11, 0.0 }
  0x9f   :  { %v173_v10 = vpop.eup %172 }
  0xa0   :  { %v74_v12 = vsel %vm67_vm0, %v173_v10, 0.0 }
  0xa1   :  { %75 = vadd.xlane.f32.xlu1 %v74_v12 }
  0xa5   :  { %85 = vadd.xlane.f32.xlu1 %v84_v13 }
 0x12a   :  { %v76_v14 = vpop.xlane.xlu1 %75 }
 0x12b   :  { %174 = vlog2.f32 %v76_v14 }
 0x12e   :  { %v86_v17 = vpop.xlane.xlu1 %85 }
 0x138   :  { %v175_v15 = vpop.eup %174 }
 0x139   :  { %v88_v16 = vmul.f32 0.6931472, %v175_v15 }
 0x13b   :  { %v89_v18 = vadd.f32 %v88_v16, %v70_v4 }
 0x13d   :  { %v90_v19 = vsub.f32 %v89_v18, %v86_v17 }
 0x13f   :  { %v91_v20 = vsel %vm66_vm2, %v90_v19, 0.0 }
 0x140   :  { %v94_v23 = vsel %vm93_vm3, %v91_v20, 0.0 }
 0x141   :  { %95 = vadd.xlane.f32.xlu1 %v94_v23 }
 0x145   :  { %111 = vadd.xlane.f32.xlu1 %v110_v24 }
 0x1ca   :  { %v96_v25 = vpop.xlane.xlu1 %95 }
 0x1cb   :  { %v97_v26 = vrot.slane %v96_v25, 4 }
 0x1cd   :  { %v98_v27 = vadd.f32 %v97_v26, %v96_v25 }
 0x1ce   :  { %v112_v28 = vpop.xlane.xlu1 %111 }
 0x1cf   :  { %v99_v29 = vrot.slane %v98_v27, 2  ;;  %v113_v30 = vrot.slane %v112_v28, 4 }
 0x1d1   :  { %v114_v31 = vadd.f32 %v113_v30, %v112_v28  ;;  %v100_v32 = vadd.f32 %v99_v29, %v98_v27 }
 0x1d3   :  { %v115_v33 = vrot.slane %v114_v31, 2  ;;  %v101_v34 = vrot.slane %v100_v32, 1 }
 0x1d5   :  { %v116_v35 = vadd.f32 %v115_v33, %v114_v31  ;;  %v102_v36 = vadd.f32 %v101_v34, %v100_v32 }
 0x1d7   :  { %164 = vpush %v102_v36  ;;  %v117_v37 = vrot.slane %v116_v35, 1 }
 0x1d9   :  { %v118_v38 = vadd.f32 %v117_v37, %v116_v35 }
 0x1db   :  { %166 = vpush %v118_v38 }
 0x208   :  { %s165_s0 = spop %164 }
 0x209   :  { %v132_v40 = vstv %s165_s0 }
 0x20c   :  { %s167_s14 = spop %166 }
 0x20d   :  { %v130_v39 = vstv %s167_s14 }
 0x20e   :  { %v131_v41 = vsel %vm128_vm4, %v130_v39, 0.0 }
 0x20f   :  { %v133_v42 = vsel %vm126_vm5, %v132_v40, %v131_v41 }
 0x210   :  { %134 = vst [vmem:[#allocation3] sm:$0x1] %v133_v42 }
 0x211   :  { %187 = shalt.err (!%p184_p4)
}
 0x212   :  { %144 = dma.vmem_to_hbm [thread:$0]  %s142_s13, 16, %s230_s2, [#allocation4]  }
 0x213   :  { %196 = dma.done.wait [#allocation4], 16  }
 0x214   :  { %197 = vsyncadd [#allocation4], 4294967280 }
 0x215   :  { %148 = vsyncpa [#allocation4], 1 }

</bundles_post_ra>
